<compile_context>
chip_gen: v6e
topology: v6e:2x2x1
jax: 0.10.0
libtpu: 0.0.40
codegen_flags: <defaults>
</compile_context>

<pallas_src>
import jax
import jax.numpy as jnp
from jax.experimental import pallas as pl
from jax.experimental.pallas import tpu as pltpu


def embedding_kernel(ids_ref, tkn_ref, pos_ref, o_ref):
    # ids_ref: (B, S) int32 in SMEM (scalar-prefetch; consumed by the index_maps)
    # tkn_ref: (1, 1, D)  gathered token-embedding row for this (b, s)
    # pos_ref: (1, 1, D)  positional-embedding row for position s
    # o_ref:   (1, 1, 1, D)
    o_ref[0] = tkn_ref[...] + pos_ref[...]


def embedding_forward(token_ids, tkn_table, pos_table):
    """token_ids: (B, S) int32. tkn_table: (V, D). pos_table: (C, D), C >= S."""
    B, S = token_ids.shape
    V, D = tkn_table.shape
    C, _ = pos_table.shape

    # Free host-side views: put a singleton axis before the feature axis so the
    # last-two dims of every block equal the full array dims.
    tkn3 = tkn_table.reshape(V, 1, D)
    pos3 = pos_table.reshape(C, 1, D)

    out4 = pl.pallas_call(
        embedding_kernel,
        out_shape=jax.ShapeDtypeStruct((B, S, 1, D), tkn_table.dtype),
        grid_spec=pltpu.PrefetchScalarGridSpec(
            num_scalar_prefetch=1,                 # token_ids -> SMEM
            grid=(B, S),
            in_specs=[
                # token-embedding row gather: block row = ids[b, s]
                pl.BlockSpec((1, 1, D), lambda b, s, ids: (ids[b, s], 0, 0)),
                # positional-embedding row: block row = s
                pl.BlockSpec((1, 1, D), lambda b, s, ids: (s, 0, 0)),
            ],
            out_specs=pl.BlockSpec((1, 1, 1, D), lambda b, s, ids: (b, s, 0, 0)),
        ),
        compiler_params=pltpu.CompilerParams(
            dimension_semantics=("parallel", "arbitrary")),
    )(token_ids, tkn3, pos3)

    # Dropout: eval mode -> identity.
    return out4.reshape(B, S, D)


def reference(token_ids, tkn_table, pos_table):
    """Pure-JAX reference mirroring the PyTorch forward (eval mode)."""
    S = token_ids.shape[1]
    return tkn_table[token_ids] + pos_table[jnp.arange(S)][None, :, :]


if __name__ == "__main__":
    # small shapes: batch=2, seq=8, vocab=64, context=16, model_dim=32
    B, S, V, C, D = 2, 8, 64, 16, 32
    key = jax.random.PRNGKey(0)
    k_ids, k_tkn, k_pos = jax.random.split(key, 3)
    token_ids = jax.random.randint(k_ids, (B, S), 0, V, dtype=jnp.int32)
    tkn_table = jax.random.normal(k_tkn, (V, D), jnp.float32)
    pos_table = jax.random.normal(k_pos, (C, D), jnp.float32)

    out = embedding_forward(token_ids, tkn_table, pos_table)
    out = jax.block_until_ready(out)

    ref = reference(token_ids, tkn_table, pos_table)
    assert out.shape == (B, S, D)
    assert jnp.allclose(out, ref, atol=1e-6, rtol=1e-6), "mismatch vs reference"
    print("KERNEL_OK")
</pallas_src>

<mosaic_0001>
module attributes {stable_mosaic.version = 11 : i64} {
  func.func @embedding_kernel(%arg0: i32, %arg1: i32, %arg2: memref<2x8xi32, #tpu.memory_space<smem>>, %arg3: memref<1x1x32xf32, #tpu.memory_space<vmem>>, %arg4: memref<1x1x32xf32, #tpu.memory_space<vmem>>, %arg5: memref<1x1x1x32xf32, #tpu.memory_space<vmem>>) attributes {dimension_semantics = [#tpu.dimension_semantics<parallel>, #tpu.dimension_semantics<arbitrary>], iteration_bounds = array<i64: 2, 8>, scalar_prefetch = 1 : i64, scratch_operands = 0 : i64, tpu.core_type = #tpu.core_type<tc>, window_params = [{transform_indices = @transform_0, window_bounds = array<i64: 1, 1, 32>}, {transform_indices = @transform_1, window_bounds = array<i64: 1, 1, 32>}, {transform_indices = @transform_2, window_bounds = array<i64: 1, 1, 1, 32>}]} {
    %c0 = arith.constant 0 : index
    %c0_0 = arith.constant 0 : index
    %c0_1 = arith.constant 0 : index
    %0 = vector.load %arg3[%c0, %c0_0, %c0_1] : memref<1x1x32xf32, #tpu.memory_space<vmem>>, vector<1x1x32xf32>
    %c0_2 = arith.constant 0 : index
    %c0_3 = arith.constant 0 : index
    %c0_4 = arith.constant 0 : index
    %1 = vector.load %arg4[%c0_2, %c0_3, %c0_4] : memref<1x1x32xf32, #tpu.memory_space<vmem>>, vector<1x1x32xf32>
    %2 = arith.addf %0, %1 : vector<1x1x32xf32>
    %c0_5 = arith.constant 0 : index
    %c0_6 = arith.constant 0 : index
    %c0_7 = arith.constant 0 : index
    %c0_8 = arith.constant 0 : index
    %3 = vector.load %arg5[%c0_5, %c0_6, %c0_7, %c0_8] : memref<1x1x1x32xf32, #tpu.memory_space<vmem>>, vector<1x1x1x32xf32>
    %4 = vector.shape_cast %3 : vector<1x1x1x32xf32> to vector<1x1x32xf32>
    %5 = vector.shape_cast %2 : vector<1x1x32xf32> to vector<1x1x1x32xf32>
    tpu.vector_store %arg5[%c0_5, %c0_6, %c0_7, %c0_8], %5 {strides = array<i32>} : memref<1x1x1x32xf32, #tpu.memory_space<vmem>>, vector<1x1x1x32xf32>,
    return
  }
  func.func @transform_0(%arg0: i32, %arg1: i32, %arg2: memref<2x8xi32, #tpu.memory_space<smem>>) -> (i32, i32, i32) {
    %0 = arith.index_cast %arg0 : i32 to index
    %1 = arith.index_cast %arg1 : i32 to index
    %2 = memref.load %arg2[%0, %1] : memref<2x8xi32, #tpu.memory_space<smem>>
    %c0_i32 = arith.constant 0 : i32
    %c0_i32_0 = arith.constant 0 : i32
    %c0_i32_1 = arith.constant 0 : i32
    return %2, %c0_i32, %c0_i32_0 : i32, i32, i32
  }
  func.func @transform_1(%arg0: i32, %arg1: i32, %arg2: memref<2x8xi32, #tpu.memory_space<smem>>) -> (i32, i32, i32) {
    %c0_i32 = arith.constant 0 : i32
    %c0_i32_0 = arith.constant 0 : i32
    %c0_i32_1 = arith.constant 0 : i32
    return %arg1, %c0_i32, %c0_i32_0 : i32, i32, i32
  }
  func.func @transform_2(%arg0: i32, %arg1: i32, %arg2: memref<2x8xi32, #tpu.memory_space<smem>>) -> (i32, i32, i32, i32) {
    %c0_i32 = arith.constant 0 : i32
    %c0_i32_0 = arith.constant 0 : i32
    %c0_i32_1 = arith.constant 0 : i32
    return %arg0, %arg1, %c0_i32, %c0_i32_0 : i32, i32, i32, i32
  }
}

</mosaic_0001>

<bundles_post_ra>
// kernel: tpu_custom_call.1
= control target key start
LH: loop header
LB: loop body
LE: loop exit
PB: predicated region body
PF: predicated region fallthrough
CT: control target
= control target key end

     0   :  { %s671_s0 = inlined_call_operand.vmem [shape: s32[2,8], index: 0, kind: input, shape index: {}]   ;;  %s672_s1 = inlined_call_operand.vmem [shape: f32[64,1,32], index: 1, kind: input, shape index: {}]   ;;  %s673_s2 = inlined_call_operand.vmem [shape: f32[16,1,32], index: 2, kind: input, shape index: {}]   ;;  %s674_s3 = inlined_call_operand.hbm [shape: f32[2,8,1,32], index: 3, kind: output, shape index: {}]  }
   0x1   :  { %s8_s14 = sshll.u32 %s671_s0, 4  ;;  %s9_s14 = int_to_ptr.vmem [resolvable:$true] %s8_s14 }
   0x2   :  { %s404_s15 = scalar_lea.vmem %s9_s14, 32  ;;  %p409_p1 = scmp.lt.s32.totalorder %s9_s14, %s9_s14 }
   0x3   :  { %p405_p0 = scmp.ne.s32.totalorder %s9_s14, %s404_s15  ;;  %p410_p2 = scmp.lt.s32.totalorder %s404_s15, %s404_s15 }
   0x5   :  { %p411_p3 = por %p410_p2, %p409_p1 }
   0x7   :  { %p412_p4 = pnand %p411_p3, %p405_p0 }
   0x9   :  { %415 = shalt.err (!%p412_p4)  }
   0xa   :  { %s512_s16 = smov [#allocation3]  }
   0xb   :  { %11 = dma.vmem_to_smem %s9_s14, 32, %s512_s16, [#allocation2] }
   0xc   :  { %474 = dma.done.wait [#allocation2], 32 }
   0xd   :  { %475 = vsyncadd [#allocation2], 4294967264 }
   0xe   :  { %13 = sfence }
   0xf   :  { %14 = vsyncpa [#allocation5], 0 }
  0x10   :  { %16 = vsyncpa [#allocation5 + $0x1], 0  ;;  %s537_s17 = smov 0   ;;  %s539_s18 = smov 0  }
  0x11   :  { %s541_s0 = smov 0   ;;  %s543_s19 = smov 0  }
  0x12   :  { %s545_s20 = smov 0   ;;  %s547_s21 = smov 0  }
  0x13   :  { %s549_s22 = smov 0   ;;  %s551_s23 = smov 0  }
  0x14 LB: > { %s320_s24 = sadd.s32 4294967295, %s510_s23   ;;  %s321_s25 = sadd.s32 4294967294, %s510_s23   ;;  %s510_s23 = sphi %s551_s23, %s22_s23   ;;  %s506_s22 = sphi %s549_s22, %s686_s22   ;;  %s502_s21 = sphi %s547_s21, %s685_s21   ;;  %s498_s20 = sphi %s545_s20, %s684_s20   ;;  %s494_s19 = sphi %s543_s19, %s683_s19   ;;  %s490_s0 = sphi %s541_s0, %s682_s0   ;;  %s486_s18 = sphi %s539_s18, %s681_s18   ;;  %s482_s17 = sphi %s537_s17, %s680_s17  }
  0x15   : > { %s31_s26 = sadd.s32 1, %s502_s21  ;;  %s34_s27 = sadd.s32 1, %s506_s22 }
  0x16   : > { %p32_p5 = scmp.ge.s32.totalorder %s31_s26, 8  ;;  %p121_p6 = scmp.ne.s32.totalorder %s490_s0, %s486_s18 }
  0x17   : > { %p122_p7 = scmp.eq.s32.totalorder %s320_s24, 15  ;;  %p127_p10 = scmp.ne.s32.totalorder %s486_s18, %s482_s17 }
  0x18   : > { %s688_s26 = smov (%p32_p5, %s31_s26), 0  ;;  %s690_s27 = smov (!%p32_p5, %s34_s27), %s506_s22 }
  0x19   : > { %s107_s28 = ssub.s32 %s502_s21, %s688_s26  ;;  %p588_p8 = por %p122_p7, %p121_p6 }
  0x1a   : > { %p36_p9 = scmp.ge.s32.totalorder %s690_s27, 2  ;;  %p128_p11 = scmp.eq.s32.totalorder %s321_s25, 15 }
  0x1b   : > { %p326_p12 = scmp.ge.s32.totalorder %s510_s23, 1  ;;  %p174_p0 = scmp.lt.s32.totalorder %s510_s23, 17 }
  0x1c   : > { %s692_s27 = smov (%p36_p9, %s690_s27), 0  ;;  %p597_p13 = por %p128_p11, %p127_p10 }
  0x1d   : > { %677 = sst [smem:[#allocation8_spill]] %s692_s27  ;;  %s106_s4 = ssub.s32 %s506_s22, %s692_s27 }
  0x1e   : > { %s111_s5 = sadd.s32 1, %s490_s0  ;;  %s108_s6 = sor.u32 %s107_s28, %s106_s4 }
  0x1f   : > { %p175_p1 = pnand %p326_p12, %p174_p0  ;;  %p109_p2 = scmp.eq.s32.totalorder %s108_s6, 0 }
  0x20   : > { %s204_s8 = sshra.s32 (!%p175_p1), %s494_s19, 7  ;;  %s209_s11 = sand.u32 (!%p175_p1), 127, %s494_s19 }
  0x21   : > { %s606_s7 = scalar_select %p109_p2, %s490_s0, %s111_s5  }
  0x22   : > { %178 = sbr.rel (%p175_p1) target bundleno = 66 (0x42), region = 28  ;;  %s206_s9 = sadd.s32 (!%p175_p1), %s498_s20, %s204_s8 }
  0x23   : > { %s327_s10 = sshll.u32 (!%p175_p1), %s206_s9, 7  ;;  %p223_p3 = scmp.lt.s32.totalorder (!%p175_p1), %s494_s19, 15 }
  0x24   : > { %s210_s12 = sadd.s32 (!%p175_p1), %s327_s10, %s209_s11  ;;  %s202_s13 = sand.u32 (!%p175_p1), 1, %s486_s18  }
  0x25   : > { %s211_s14 = sld [smem:[#allocation3 + %s210_s12]] (!%p175_p1)  ;;  %s328_s16 = sshll.u32 (!%p175_p1), %s498_s20, 3 }
  0x26   : > { %s242_s4 = sadd.s32 (!%p175_p1), %s494_s19, %s328_s16  ;;  %s203_s5 = scalar_lea.vmem (!%p175_p1), [#allocation4], %s202_s13 }
  0x27   : > { %s224_s15 = scalar_select %p223_p3, %s494_s19, 15  ;;  %vm229_vm0 = vcmask 253952  }
  0x28   : > { %s246_s6 = sshll.u32 %s203_s5, 4  ;;  %s329_s8 = sshll.u32 %s242_s4, 4  ;;  %s622_s6 = int_to_ptr.vmem [resolvable:$true] %s246_s6 }
  0x29   : > { %s225_s28 = scalar_lea.vmem %s673_s2, %s224_s15  ;;  %s244_s11 = scalar_lea.hbm %s674_s3, %s329_s8 }
  0x2a   : > { %v227_v0 = vld [vmem:[%s225_s28] sm:$0x1]  ;;  %s232_s12 = scalar_lea.sflag [#allocation5], %s202_s13  ;;  %s416_s15 = scalar_lea.vmem %s622_s6, 16 }
  0x2b   : > { %p212_p4 = scmp.lt.s32.totalorder %s211_s14, 63  ;;  %p417_p5 = scmp.ne.s32.totalorder %s622_s6, %s416_s15 }
  0x2c   : > { %s513_s27 = smov [#allocation4]  }
  0x2d   : > { %s694_s14 = smov (!%p212_p4, %s211_s14), 63  ;;  %p418_p6 = pnand %p417_p5, %p588_p8 }
  0x2e   : > { %s214_s10 = scalar_lea.vmem %s672_s1, %s694_s14  ;;  %s420_s14 = sshll.u32 %s513_s27, 4  ;;  %s421_s14 = int_to_ptr.vmem [resolvable:$false] %s420_s14 }
  0x2f   : > { %v226_v1 = vld [vmem:[%s214_s10] sm:$0x1]  ;;  %p419_p7 = pneg %p418_p6  ;;  %s422_s16 = scalar_lea.vmem %s421_s14, 32 }
  0x30   : > { %v228_v2 = vadd.f32 %v227_v0, %v226_v1  ;;  %p423_p9 = scmp.lt.s32.totalorder %s622_s6, %s421_s14  ;;  %p424_p10 = scmp.lt.s32.totalorder %s422_s16, %s416_s15 }
  0x32   : > { %230 = vst.msk [vmem:[%s203_s5] sm:$0x1] %vm229_vm0, %v228_v2  ;;  %p425_p11 = por %p424_p10, %p423_p9 }
  0x34   : > { %p426_p12 = pnand %p425_p11, %p419_p7 }
  0x36   : > { %429 = shalt.err (!%p426_p12)
}
  0x37   : > { %s430_s24 = scalar_lea.hbm %s244_s11, 16  ;;  %s434_s28 = scalar_lea.hbm %s674_s3, 256 }
  0x38   : > { %p431_p0 = scmp.ne.s32.totalorder %s244_s11, %s430_s24  ;;  %p435_p3 = scmp.lt.s32.totalorder %s244_s11, %s674_s3 }
  0x39   : > { %p436_p4 = scmp.lt.s32.totalorder %s434_s28, %s430_s24 }
  0x3a   : > { %p432_p1 = pnand %p431_p0, %p588_p8 }
  0x3b   : > { %p437_p5 = por %p436_p4, %p435_p3 }
  0x3c   : > { %p433_p2 = pneg %p432_p1 }
  0x3e   : > { %p438_p6 = pnand %p437_p5, %p433_p2 }
  0x40   : > { %441 = shalt.err (!%p438_p6)
}
  0x41   : > { %332 = dma.vmem_to_hbm [thread:$0]  (%p588_p8), %s622_s6, 16, %s244_s11, %s232_s12  }
  0x42 PF: > { %p338_p7 = scmp.ge.s32.totalorder %s510_s23, 2  ;;  %s258_s8 = sand.u32 1, %s482_s17  }
  0x43   : > { %s259_s9 = scalar_lea.sflag [#allocation5], %s258_s8 }
  0x44   : > { %p335_p9 = pnand %p338_p7, %p597_p13 }
  0x46   : > { %p336_p10 = pneg %p335_p9 }
  0x48   : > { %477 = dma.done.wait (%p336_p10), %s259_s9, 16  }
  0x49   : > { %479 = vsyncadd (%p336_p10), %s259_s9, 4294967280  ;;  %s22_s23 = sadd.s32 1, %s510_s23   ;;  %s679_s29 = sld [smem:[#allocation8_spill]] }
  0x4a   : > { %p19_p11 = scmp.ge.s32.totalorder %s22_s23, 18   ;;  %s680_s17 = smov %s486_s18 }
  0x4b   : > { %s681_s18 = smov %s490_s0  ;;  %s682_s0 = smov %s606_s7 }
  0x4c   : > { %s683_s19 = smov %s502_s21  ;;  %s684_s20 = smov %s506_s22 }
  0x4d   : > { %s685_s21 = smov %s688_s26  ;;  %21 = sbr.rel (!%p19_p11) target bundleno = 20 (0x14), region = 66 }
  0x4f   : > { %s686_s22 = smov %s679_s29 }
  0x52   :  { %263 = vsyncpa [#allocation5], 1 }
  0x53   :  { %265 = vsyncpa [#allocation5 + $0x1], 1 }

</bundles_post_ra>
